<compile_context>
chip_gen: v7x
topology: tpu7x:2x2x1
jax: 0.10.0
libtpu: 0.0.40
codegen_flags: <defaults>
</compile_context>

<pallas_src>
import functools

import jax
import jax.numpy as jnp
from jax.experimental import pallas as pl
from jax.experimental.pallas import tpu as pltpu


def edge_decoder_kernel(edge_ref, zt_ref, w1t_ref, b1_ref, w2_ref, b2_ref, o_ref):
    # edge_ref: (2, tile_e) int32      zt_ref:  (F, N)  f32   (VMEM-resident z^T)
    # w1t_ref:  (H, F)                 b1_ref:  (H, 1)
    # w2_ref:   (H, 1)                 b2_ref:  (1, 1)  f32 in SMEM
    # o_ref:    (1, tile_e)            (lane-dense output row)
    n = zt_ref.shape[1]
    tile_e = edge_ref.shape[1]

    idx_src = edge_ref[0:1, :]                                   # (1, tile_e)
    idx_dst = edge_ref[1:2, :]                                   # (1, tile_e)
    node_iota = jax.lax.broadcasted_iota(jnp.int32, (n, tile_e), 0)

    # Fused gather via one-hot MXU matmul (exact: selects rows of z).
    oh_src = (node_iota == idx_src).astype(zt_ref.dtype)         # (N, tile_e)
    oh_dst = (node_iota == idx_dst).astype(zt_ref.dtype)         # (N, tile_e)
    za_t = jnp.dot(zt_ref[...], oh_src, preferred_element_type=jnp.float32)
    zb_t = jnp.dot(zt_ref[...], oh_dst, preferred_element_type=jnp.float32)

    # Elementwise edge feature product, edges on the lane axis.
    x_t = za_t * zb_t                                            # (F, tile_e)

    # Layer 1: relu(W1 x + b1)  -> (H, tile_e)
    h_t = jnp.dot(w1t_ref[...], x_t, preferred_element_type=jnp.float32)
    h_t = jnp.maximum(h_t + b1_ref[...], 0.0)

    # Layer 2 (out_channels == 1): VPU multiply + sublane reduction instead of
    # a width-1 MXU matmul; bias from SMEM scalar.
    y = jnp.sum(h_t * w2_ref[...], axis=0, keepdims=True) + b2_ref[0, 0]

    o_ref[...] = jax.nn.sigmoid(y).astype(o_ref.dtype)           # (1, tile_e)


@functools.partial(jax.jit, static_argnames=("tile_e",))
def edge_decoder_forward(z, edge, w1, b1, w2, b2, *, tile_e=512):
    """EdgeDecoder.forward(z, edge, sigmoid=True, reduction=False)."""
    assert tile_e % 128 == 0, "tile_e must be a multiple of 128 (lane-dense)"
    N, F = z.shape
    H = w1.shape[1]
    E = edge.shape[1]

    num_tiles = pl.cdiv(E, tile_e)
    e_pad = num_tiles * tile_e

    edge_i32 = edge.astype(jnp.int32)
    if e_pad != E:
        # Pad with node 0 (valid index); padded outputs are sliced off below.
        edge_i32 = jnp.zeros((2, e_pad), jnp.int32).at[:, :E].set(edge_i32)

    # Layout plumbing (one-time, tiny): keep node features / weights transposed
    # so the whole kernel is edges-on-lanes.
    z_t = z.T.astype(jnp.float32)            # (F, N)   resident in VMEM
    w1_t = w1.T.astype(jnp.float32)          # (H, F)   resident in VMEM
    b1_col = b1.reshape(H, 1).astype(jnp.float32)
    w2_col = w2.reshape(H, 1).astype(jnp.float32)
    b2_s = b2.reshape(1, 1).astype(jnp.float32)

    out = pl.pallas_call(
        edge_decoder_kernel,
        out_shape=jax.ShapeDtypeStruct((1, e_pad), jnp.float32),
        grid_spec=pltpu.PrefetchScalarGridSpec(
            num_scalar_prefetch=0,
            grid=(num_tiles,),
            in_specs=[
                pl.BlockSpec((2, tile_e), lambda i: (0, i)),     # edge tile
                pl.BlockSpec((F, N), lambda i: (0, 0)),          # z^T (resident)
                pl.BlockSpec((H, F), lambda i: (0, 0)),          # W1^T (resident)
                pl.BlockSpec((H, 1), lambda i: (0, 0)),          # b1 column
                pl.BlockSpec((H, 1), lambda i: (0, 0)),          # w2 column
                pl.BlockSpec(memory_space=pltpu.MemorySpace.SMEM),  # b2 scalar
            ],
            out_specs=pl.BlockSpec((1, tile_e), lambda i: (0, i)),
        ),
        compiler_params=pltpu.CompilerParams(
            dimension_semantics=("parallel",),
            vmem_limit_bytes=32 * 1024 * 1024,
        ),
    )(edge_i32, z_t, w1_t, b1_col, w2_col, b2_s)

    # Lane-dense (1, E_pad) slab -> (E, 1), dropping any padded edges.
    return out.reshape(-1)[:E].reshape(E, 1)


def init_params(key, in_channels, hidden_channels, out_channels=1):
    """Deterministic init mimicking nn.Linear default (uniform +-1/sqrt(fan_in))."""
    k1, k2, k3, k4 = jax.random.split(key, 4)
    lim1 = 1.0 / jnp.sqrt(jnp.float32(in_channels))
    lim2 = 1.0 / jnp.sqrt(jnp.float32(hidden_channels))
    # Stored pre-transposed: W1 is [in, hidden], W2 is [hidden, out].
    w1 = jax.random.uniform(k1, (in_channels, hidden_channels), jnp.float32, -lim1, lim1)
    b1 = jax.random.uniform(k2, (1, hidden_channels), jnp.float32, -lim1, lim1)
    w2 = jax.random.uniform(k3, (hidden_channels, out_channels), jnp.float32, -lim2, lim2)
    b2 = jax.random.uniform(k4, (1, out_channels), jnp.float32, -lim2, lim2)
    return w1, b1, w2, b2


def reference_forward(z, edge, w1, b1, w2, b2):
    x = z[edge[0]] * z[edge[1]]
    h = jnp.maximum(x @ w1 + b1, 0.0)
    y = h @ w2 + b2
    return jax.nn.sigmoid(y)


if __name__ == "__main__":
    key = jax.random.PRNGKey(0)
    k_z, k_e, k_p = jax.random.split(key, 3)

    N = 64            # number of nodes
    F_dim = 32        # in_channels
    H = 32            # hidden_channels
    E = 1000          # number of edges (not a tile multiple -> exercises padding)

    z = jax.random.normal(k_z, (N, F_dim), dtype=jnp.float32)
    edge = jax.random.randint(k_e, (2, E), 0, N, dtype=jnp.int32)
    w1, b1, w2, b2 = init_params(k_p, F_dim, H, out_channels=1)

    out = edge_decoder_forward(z, edge, w1, b1, w2, b2, tile_e=512)
    out = jax.block_until_ready(out)

    ref = reference_forward(z, edge, w1, b1, w2, b2)
    assert out.shape == (E, 1)
    assert jnp.allclose(out, ref, atol=1e-5, rtol=1e-5), "mismatch vs reference"

    print("KERNEL_OK")
</pallas_src>

<mosaic_0001>
module attributes {stable_mosaic.version = 11 : i64} {
  func.func @edge_decoder_kernel(%arg0: i32, %arg1: memref<2x512xi32, #tpu.memory_space<vmem>>, %arg2: memref<32x64xf32, #tpu.memory_space<vmem>>, %arg3: memref<32x32xf32, #tpu.memory_space<vmem>>, %arg4: memref<32x1xf32, #tpu.memory_space<vmem>>, %arg5: memref<32x1xf32, #tpu.memory_space<vmem>>, %arg6: memref<1x1xf32, #tpu.memory_space<smem>>, %arg7: memref<1x512xf32, #tpu.memory_space<vmem>>) attributes {dimension_semantics = [#tpu.dimension_semantics<parallel>], iteration_bounds = array<i64: 2>, scalar_prefetch = 0 : i64, scratch_operands = 0 : i64, tpu.core_type = #tpu.core_type<tc>, window_params = [{transform_indices = @transform_0, window_bounds = array<i64: 2, 512>}, {pipeline_mode = #tpu.pipeline_mode<synchronous>, transform_indices = @transform_1, window_bounds = array<i64: 32, 64>}, {pipeline_mode = #tpu.pipeline_mode<synchronous>, transform_indices = @transform_2, window_bounds = array<i64: 32, 32>}, {pipeline_mode = #tpu.pipeline_mode<synchronous>, transform_indices = @transform_3, window_bounds = array<i64: 32, 1>}, {pipeline_mode = #tpu.pipeline_mode<synchronous>, transform_indices = @transform_4, window_bounds = array<i64: 32, 1>}, {transform_indices = @transform_5, window_bounds = array<i64: 1, 1>}, {transform_indices = @transform_6, window_bounds = array<i64: 1, 512>}]} {
    %c0 = arith.constant 0 : index
    %c0_0 = arith.constant 0 : index
    %0 = vector.load %arg1[%c0, %c0_0] : memref<2x512xi32, #tpu.memory_space<vmem>>, vector<1x512xi32>
    %c1 = arith.constant 1 : index
    %c0_1 = arith.constant 0 : index
    %1 = vector.load %arg1[%c1, %c0_1] : memref<2x512xi32, #tpu.memory_space<vmem>>, vector<1x512xi32>
    %2 = tpu.iota {dimensions = array<i32: 0>} : vector<64x512xi32>
    %3 = vector.broadcast %0 : vector<1x512xi32> to vector<64x512xi32>
    %4 = arith.cmpi eq, %2, %3 : vector<64x512xi32>
    %5 = arith.extui %4 : vector<64x512xi1> to vector<64x512xi32>
    %6 = arith.sitofp %5 : vector<64x512xi32> to vector<64x512xf32>
    %7 = vector.broadcast %1 : vector<1x512xi32> to vector<64x512xi32>
    %8 = arith.cmpi eq, %2, %7 : vector<64x512xi32>
    %9 = arith.extui %8 : vector<64x512xi1> to vector<64x512xi32>
    %10 = arith.sitofp %9 : vector<64x512xi32> to vector<64x512xf32>
    %c0_2 = arith.constant 0 : index
    %c0_3 = arith.constant 0 : index
    %11 = vector.load %arg2[%c0_2, %c0_3] : memref<32x64xf32, #tpu.memory_space<vmem>>, vector<32x64xf32>
    %cst = arith.constant dense<0.000000e+00> : vector<32x512xf32>
    %12 = tpu.matmul %11, %6, %cst {dimension_numbers = #tpu.dot_dimension_numbers<[1], [0], [0], [1], [0, 0, 1, 1], [], []>} : vector<32x64xf32>, vector<64x512xf32>, vector<32x512xf32> -> vector<32x512xf32>
    %c0_4 = arith.constant 0 : index
    %c0_5 = arith.constant 0 : index
    %13 = vector.load %arg2[%c0_4, %c0_5] : memref<32x64xf32, #tpu.memory_space<vmem>>, vector<32x64xf32>
    %cst_6 = arith.constant dense<0.000000e+00> : vector<32x512xf32>
    %14 = tpu.matmul %13, %10, %cst_6 {dimension_numbers = #tpu.dot_dimension_numbers<[1], [0], [0], [1], [0, 0, 1, 1], [], []>} : vector<32x64xf32>, vector<64x512xf32>, vector<32x512xf32> -> vector<32x512xf32>
    %15 = arith.mulf %12, %14 : vector<32x512xf32>
    %c0_7 = arith.constant 0 : index
    %c0_8 = arith.constant 0 : index
    %16 = vector.load %arg3[%c0_7, %c0_8] : memref<32x32xf32, #tpu.memory_space<vmem>>, vector<32x32xf32>
    %cst_9 = arith.constant dense<0.000000e+00> : vector<32x512xf32>
    %17 = tpu.matmul %16, %15, %cst_9 {dimension_numbers = #tpu.dot_dimension_numbers<[1], [0], [0], [1], [0, 0, 1, 1], [], []>} : vector<32x32xf32>, vector<32x512xf32>, vector<32x512xf32> -> vector<32x512xf32>
    %c0_10 = arith.constant 0 : index
    %c0_11 = arith.constant 0 : index
    %18 = vector.load %arg4[%c0_10, %c0_11] : memref<32x1xf32, #tpu.memory_space<vmem>>, vector<32x1xf32>
    %19 = vector.broadcast %18 : vector<32x1xf32> to vector<32x512xf32>
    %20 = arith.addf %17, %19 : vector<32x512xf32>
    %cst_12 = arith.constant 0.000000e+00 : f32
    %21 = vector.broadcast %cst_12 : f32 to vector<32x512xf32>
    %22 = arith.maximumf %20, %21 : vector<32x512xf32>
    %c0_13 = arith.constant 0 : index
    %c0_14 = arith.constant 0 : index
    %23 = vector.load %arg5[%c0_13, %c0_14] : memref<32x1xf32, #tpu.memory_space<vmem>>, vector<32x1xf32>
    %24 = vector.broadcast %23 : vector<32x1xf32> to vector<32x512xf32>
    %25 = arith.mulf %22, %24 : vector<32x512xf32>
    %cst_15 = arith.constant dense<0.000000e+00> : vector<512xf32>
    %26 = vector.multi_reduction <add>, %25, %cst_15 [0] : vector<32x512xf32> to vector<512xf32>
    %27 = vector.shape_cast %26 : vector<512xf32> to vector<1x512xf32>
    %c0_16 = arith.constant 0 : index
    %c0_17 = arith.constant 0 : index
    %28 = memref.load %arg6[%c0_16, %c0_17] : memref<1x1xf32, #tpu.memory_space<smem>>
    %29 = vector.broadcast %28 : f32 to vector<1x512xf32>
    %30 = arith.addf %27, %29 : vector<1x512xf32>
    %31 = arith.negf %30 : vector<1x512xf32>
    %32 = math.exp %31 : vector<1x512xf32>
    %cst_18 = arith.constant 1.000000e+00 : f32
    %33 = vector.broadcast %cst_18 : f32 to vector<1x512xf32>
    %34 = arith.addf %33, %32 : vector<1x512xf32>
    %35 = arith.divf %33, %34 : vector<1x512xf32>
    %c0_19 = arith.constant 0 : index
    %c0_20 = arith.constant 0 : index
    %36 = vector.load %arg7[%c0_19, %c0_20] : memref<1x512xf32, #tpu.memory_space<vmem>>, vector<1x512xf32>
    tpu.vector_store %arg7[%c0_19, %c0_20], %35 {strides = array<i32>} : memref<1x512xf32, #tpu.memory_space<vmem>>, vector<1x512xf32>,
    return
  }
  func.func @transform_0(%arg0: i32) -> (i32, i32) {
    %c0_i32 = arith.constant 0 : i32
    %c0_i32_0 = arith.constant 0 : i32
    return %c0_i32, %arg0 : i32, i32
  }
  func.func @transform_1(%arg0: i32) -> (i32, i32) {
    %c0_i32 = arith.constant 0 : i32
    %c0_i32_0 = arith.constant 0 : i32
    %c0_i32_1 = arith.constant 0 : i32
    return %c0_i32, %c0_i32_0 : i32, i32
  }
  func.func @transform_2(%arg0: i32) -> (i32, i32) {
    %c0_i32 = arith.constant 0 : i32
    %c0_i32_0 = arith.constant 0 : i32
    %c0_i32_1 = arith.constant 0 : i32
    return %c0_i32, %c0_i32_0 : i32, i32
  }
  func.func @transform_3(%arg0: i32) -> (i32, i32) {
    %c0_i32 = arith.constant 0 : i32
    %c0_i32_0 = arith.constant 0 : i32
    %c0_i32_1 = arith.constant 0 : i32
    return %c0_i32, %c0_i32_0 : i32, i32
  }
  func.func @transform_4(%arg0: i32) -> (i32, i32) {
    %c0_i32 = arith.constant 0 : i32
    %c0_i32_0 = arith.constant 0 : i32
    %c0_i32_1 = arith.constant 0 : i32
    return %c0_i32, %c0_i32_0 : i32, i32
  }
  func.func @transform_5(%arg0: i32) -> (i32, i32) {
    %c0_i32 = arith.constant 0 : i32
    %c0_i32_0 = arith.constant 0 : i32
    %c0_i32_1 = arith.constant 0 : i32
    return %c0_i32, %c0_i32_0 : i32, i32
  }
  func.func @transform_6(%arg0: i32) -> (i32, i32) {
    %c0_i32 = arith.constant 0 : i32
    %c0_i32_0 = arith.constant 0 : i32
    return %c0_i32, %arg0 : i32, i32
  }
}

</mosaic_0001>

<bundles_post_ra>
// kernel: edge_decoder_forward.1
= control target key start
LH: loop header
LB: loop body
LE: loop exit
PB: predicated region body
PF: predicated region fallthrough
CT: control target
= control target key end

     0   :  { %s1631_s23 = smov 0   ;;  %s2004_s0 = inlined_call_operand.vmem [shape: s32[2,1024], index: 0, kind: input, shape index: {}]   ;;  %s2005_s1 = inlined_call_operand.vmem [shape: f32[32,64], index: 1, kind: input, shape index: {}]   ;;  %s2006_s2 = inlined_call_operand.vmem [shape: f32[32,32], index: 2, kind: input, shape index: {}]   ;;  %s2007_s3 = inlined_call_operand.vmem [shape: f32[32,1], index: 3, kind: input, shape index: {}]   ;;  %s2008_s4 = inlined_call_operand.vmem [shape: f32[32,1], index: 4, kind: input, shape index: {}]   ;;  %s2009_s5 = inlined_call_operand.<no memory space> [shape: f32[1,1], index: 5, kind: input, shape index: {}]   ;;  %s2010_s6 = inlined_call_operand.vmem [shape: f32[1,1024], index: 6, kind: output, shape index: {}]  }
   0x1   :  { %11 = sst [smem:[#allocation2]] %s2009_s5 }
   0x2 LB: > { %s1304_s24 = sadd.s32 4294967295, %s1587_s23   ;;  %p1308_p0 = scmp.ge.s32.totalorder %s1587_s23, 1  ;;  %s1587_s23 = sphi %s1631_s23, %s17_s23  }
   0x3   : > { %p214_p1 = scmp.lt.s32.totalorder %s1587_s23, 3 }
   0x5   : > { %p215_p2 = pnand %p1308_p0, %p214_p1 }
   0x6   : > { %s1309_s25 = sshll.u32 (!%p215_p2), %s1304_s24, 2  ;;  %v257_v0 = vlaneseq (!%p215_p2)  ;;  %v1589_v1 = vmov (!%p215_p2), 0.0   ;;  %v1590_v15 = vmov (!%p215_p2), 1.0|1.0   ;;  %v1801_v25 = vld [vmem:[%s2005_s1] sm:$0xff] (!%p215_p2)  ;;  %v1830_v26 = vld [vmem:[%s2005_s1 + $0x8] sm:$0xff] (!%p215_p2) }
   0x7   : > { %218 = sbr.rel (%p215_p2) target bundleno = 572 (0x23c), region = 44  ;;  %p244_p3 = scmp.lt.s32.totalorder (!%p215_p2), %s1309_s25, 7  ;;  %571 = vmatprep.mubr.f32.mxu0 (!%p215_p2), %v1589_v1  ;;  %660 = vmatprep.mubr.f32.mxu1 (!%p215_p2), %v1589_v1  ;;  %v492_v27 = vld [vmem:[%s2005_s1 + $0x10] sm:$0xff] (!%p215_p2)  ;;  %v493_v28 = vld [vmem:[%s2005_s1 + $0x18] sm:$0xff] (!%p215_p2)  ;;  %v883_v29 = vld [vmem:[%s2007_s3] sm:$0xff] (!%p215_p2)  ;;  %v1591_v31 = vmov (!%p215_p2), 0  }
   0x8   : > { %v1642_v2 = vshrl.u32 (!%p215_p2), %v257_v0, 7  ;;  %v885_v30 = vld [vmem:[%s2007_s3 + $0x10] sm:$0xff] (!%p215_p2)  ;;  %1563 = vset.pattern.permute.xlu0 (!%p215_p2), %v1591_v31  ;;  %1564 = vset.pattern.permute.xlu1 (!%p215_p2), %v1591_v31  ;;  %v884_v32 = vld [vmem:[%s2007_s3 + $0x8] sm:$0xff] (!%p215_p2)  ;;  %v886_v33 = vld [vmem:[%s2007_s3 + $0x18] sm:$0xff] (!%p215_p2)  ;;  %s1190_s14 = sld [smem:[#allocation2]] (!%p215_p2) }
   0x9   : > { %889 = vperm.xlu0 (!%p215_p2), %1563, %v883_v29   ;;  %899 = vperm.xlu1 (!%p215_p2), %1564, %v885_v30   ;;  %v1114_v34 = vld [vmem:[%s2008_s4] sm:$0xff] (!%p215_p2)  ;;  %v1115_v35 = vld [vmem:[%s2008_s4 + $0x8] sm:$0xff] (!%p215_p2)  ;;  %v1116_v36 = vld [vmem:[%s2008_s4 + $0x10] sm:$0xff] (!%p215_p2) }
   0xa   : > { %v272_v3 = vsub.s32 (!%p215_p2), 1, %v1642_v2  ;;  %v280_v4 = vsub.s32 (!%p215_p2), 3, %v1642_v2  ;;  %v268_v5 = vsub.s32 (!%p215_p2), 0, %v1642_v2  ;;  %v276_v6 = vsub.s32 (!%p215_p2), 2, %v1642_v2  ;;  %v1117_v37 = vld [vmem:[%s2008_s4 + $0x18] sm:$0xff] (!%p215_p2) }
   0xb   : > { %v1657_v7 = vadd.s32 (!%p215_p2), 8, %v1642_v2  ;;  %v1661_v9 = vadd.s32 (!%p215_p2), 16, %v1642_v2  ;;  %v1664_v10 = vadd.s32 (!%p215_p2), 24, %v1642_v2  ;;  %v1704_v16 = vadd.s32 (!%p215_p2), 32, %v1642_v2 }
   0xc   : > { %v1707_v17 = vadd.s32 (!%p215_p2), 40, %v1642_v2  ;;  %v1730_v18 = vadd.s32 (!%p215_p2), 48, %v1642_v2  ;;  %v1733_v19 = vadd.s32 (!%p215_p2), 56, %v1642_v2 }
   0xd   : > { %894 = vperm.xlu0 (!%p215_p2), %1563, %v884_v32   ;;  %904 = vperm.xlu1 (!%p215_p2), %1564, %v886_v33   ;;  %v879_v33 = vld [vmem:[%s2006_s2] sm:$0xff] (!%p215_p2) }
   0xe   : > { %s2012_s25 = smov (!%p244_p3, %s1309_s25), 7 }
   0xf   : > { %s1310_s5 = sshll.u32 %s2012_s25, 1  ;;  %s252_s17 = scalar_lea.vmem %s2010_s6, %s2012_s25 }
  0x10   : > { %s1654_s28 = scalar_lea.vmem %s2004_s0, %s1310_s5 }
  0x11   : > { %v254_v8 = vld [vmem:[%s1654_s28] ss:$2 sm:$0xf]  ;;  %v1312_v20 = vld [vmem:[%s1654_s28 + $0x1] ss:$2 sm:$0xf]  ;;  %1120 = vperm.xlu0 %1563, %v1114_v34   ;;  %1125 = vperm.xlu1 %1564, %v1115_v35  }
  0x12   : > { %v1668_v11 = vrot.slane %v254_v8, %v272_v3  ;;  %v1672_v12 = vrot.slane %v254_v8, %v280_v4  ;;  %v1676_v13 = vrot.slane %v254_v8, %v268_v5  ;;  %v1680_v14 = vrot.slane %v254_v8, %v276_v6  ;;  %v880_v34 = vld [vmem:[%s2006_s2 + $0x8] sm:$0xff]  ;;  %v881_v35 = vld [vmem:[%s2006_s2 + $0x10] sm:$0xff] }
  0x13   : > { %v1758_v21 = vrot.slane %v1312_v20, %v272_v3  ;;  %v1767_v22 = vrot.slane %v1312_v20, %v280_v4  ;;  %v1776_v23 = vrot.slane %v1312_v20, %v268_v5  ;;  %v1785_v24 = vrot.slane %v1312_v20, %v276_v6 }
  0x14   : > { %vm283_vm0 = vcmp.eq.s32.totalorder %v1642_v2, %v1668_v11  ;;  %vm287_vm1 = vcmp.eq.s32.totalorder %v1657_v7, %v1668_v11  ;;  %vm285_vm2 = vcmp.eq.s32.totalorder %v1642_v2, %v1672_v12  ;;  %vm289_vm3 = vcmp.eq.s32.totalorder %v1657_v7, %v1672_v12 }
  0x15   : > { %vm1471_vm4 = vmpackc.low %vm287_vm1, %vm283_vm0  ;;  %vm282_vm5 = vcmp.eq.s32.totalorder %v1642_v2, %v1676_v13  ;;  %vm286_vm6 = vcmp.eq.s32.totalorder %v1657_v7, %v1676_v13  ;;  %vm284_vm7 = vcmp.eq.s32.totalorder %v1642_v2, %v1680_v14  ;;  %vm288_vm8 = vcmp.eq.s32.totalorder %v1657_v7, %v1680_v14  ;;  %1130 = vperm.xlu0 %1563, %v1116_v36   ;;  %v882_v36 = vld [vmem:[%s2006_s2 + $0x18] sm:$0xff] }
  0x16   : > { %1472 = vmatprep.subr.msk.bf16.mxu0 %vm1471_vm4, %v1590_v15  ;;  %vm1487_vm9 = vmpackc.low %vm289_vm3, %vm285_vm2  ;;  %vm291_vm10 = vcmp.eq.s32.totalorder %v1661_v9, %v1668_v11  ;;  %vm295_vm11 = vcmp.eq.s32.totalorder %v1664_v10, %v1668_v11  ;;  %vm293_vm13 = vcmp.eq.s32.totalorder %v1661_v9, %v1672_v12  ;;  %vm297_vm14 = vcmp.eq.s32.totalorder %v1664_v10, %v1672_v12 }
  0x17   : > { %1488 = vmatprep.subr.msk.bf16.mxu1 %vm1487_vm9, %v1590_v15  ;;  %vm1473_vm12 = vmpackc.low %vm286_vm6, %vm282_vm5  ;;  %vm290_vm0 = vcmp.eq.s32.totalorder %v1661_v9, %v1676_v13  ;;  %vm294_vm1 = vcmp.eq.s32.totalorder %v1664_v10, %v1676_v13  ;;  %vm292_vm3 = vcmp.eq.s32.totalorder %v1661_v9, %v1680_v14  ;;  %vm296_vm4 = vcmp.eq.s32.totalorder %v1664_v10, %v1680_v14 }
  0x18   : > { %1474 = vmatpush1.bf16.msk.msra.mxu0 %vm1473_vm12, %v1590_v15  ;;  %vm1489_vm15 = vmpackc.low %vm288_vm8, %vm284_vm7  ;;  %vm299_vm6 = vcmp.eq.s32.totalorder %v1704_v16, %v1668_v11  ;;  %vm303_vm7 = vcmp.eq.s32.totalorder %v1707_v17, %v1668_v11  ;;  %vm301_vm9 = vcmp.eq.s32.totalorder %v1704_v16, %v1672_v12  ;;  %vm298_vm12 = vcmp.eq.s32.totalorder %v1704_v16, %v1676_v13 }
  0x19   : > { %1490 = vmatpush1.bf16.msk.msra.mxu1 %vm1489_vm15, %v1590_v15  ;;  %vm1475_vm2 = vmpackc.low %vm295_vm11, %vm291_vm10  ;;  %vm305_vm10 = vcmp.eq.s32.totalorder %v1707_v17, %v1672_v12  ;;  %vm300_vm15 = vcmp.eq.s32.totalorder %v1704_v16, %v1680_v14  ;;  %1135 = vperm.xlu1 %1564, %v1117_v37  }
  0x1a   : > { %1476 = vmatprep.subr.msk.bf16.mxu0 %vm1475_vm2, %v1590_v15  ;;  %vm1491_vm5 = vmpackc.low %vm297_vm14, %vm293_vm13  ;;  %vm302_vm13 = vcmp.eq.s32.totalorder %v1707_v17, %v1676_v13  ;;  %vm307_vm2 = vcmp.eq.s32.totalorder %v1730_v18, %v1668_v11 }
  0x1b   : > { %1492 = vmatprep.subr.msk.bf16.mxu1 %vm1491_vm5, %v1590_v15  ;;  %vm1477_vm8 = vmpackc.low %vm294_vm1, %vm290_vm0  ;;  %vm304_vm0 = vcmp.eq.s32.totalorder %v1707_v17, %v1680_v14  ;;  %vm309_vm5 = vcmp.eq.s32.totalorder %v1730_v18, %v1672_v12 }
  0x1c   : > { %1478 = vmatpush1.bf16.msk.msra.mxu0 %vm1477_vm8, %v1590_v15  ;;  %vm1493_vm11 = vmpackc.low %vm296_vm4, %vm292_vm3  ;;  %vm311_vm3 = vcmp.eq.s32.totalorder %v1733_v19, %v1668_v11  ;;  %vm306_vm8 = vcmp.eq.s32.totalorder %v1730_v18, %v1676_v13 }
  0x1d   : > { %1494 = vmatpush1.bf16.msk.msra.mxu1 %vm1493_vm11, %v1590_v15  ;;  %vm1479_vm14 = vmpackc.low %vm303_vm7, %vm299_vm6  ;;  %vm313_vm6 = vcmp.eq.s32.totalorder %v1733_v19, %v1672_v12  ;;  %vm308_vm11 = vcmp.eq.s32.totalorder %v1730_v18, %v1680_v14 }
  0x1e   : > { %1480 = vmatprep.subr.msk.bf16.mxu0 %vm1479_vm14, %v1590_v15  ;;  %vm1495_vm1 = vmpackc.low %vm305_vm10, %vm301_vm9  ;;  %vm310_vm9 = vcmp.eq.s32.totalorder %v1733_v19, %v1676_v13  ;;  %vm395_vm14 = vcmp.eq.s32.totalorder %v1642_v2, %v1758_v21 }
  0x1f   : > { %1496 = vmatprep.subr.msk.bf16.mxu1 %vm1495_vm1, %v1590_v15  ;;  %vm1481_vm4 = vmpackc.low %vm302_vm13, %vm298_vm12  ;;  %vm312_vm12 = vcmp.eq.s32.totalorder %v1733_v19, %v1680_v14  ;;  %vm397_vm1 = vcmp.eq.s32.totalorder %v1642_v2, %v1767_v22 }
  0x20   : > { %1482 = vmatpush1.bf16.msk.msra.mxu0 %vm1481_vm4, %v1590_v15  ;;  %vm1497_vm7 = vmpackc.low %vm304_vm0, %vm300_vm15  ;;  %vm399_vm15 = vcmp.eq.s32.totalorder %v1657_v7, %v1758_v21  ;;  %vm494_vm4 = vcmask 523264  }
  0x21   : > { %1498 = vmatpush1.bf16.msk.msra.mxu1 %vm1497_vm7, %v1590_v15  ;;  %vm1483_vm10 = vmpackc.low %vm311_vm3, %vm307_vm2  ;;  %vm401_vm2 = vcmp.eq.s32.totalorder %v1657_v7, %v1767_v22 }
  0x22   : > { %1484 = vmatprep.subr.msk.bf16.mxu0 %vm1483_vm10, %v1590_v15  ;;  %vm1499_vm13 = vmpackc.low %vm313_vm6, %vm309_vm5  ;;  %vm394_vm5 = vcmp.eq.s32.totalorder %v1642_v2, %v1776_v23  ;;  %vm398_vm6 = vcmp.eq.s32.totalorder %v1657_v7, %v1776_v23 }
  0x23   : > { %1500 = vmatprep.subr.msk.bf16.mxu1 %vm1499_vm13, %v1590_v15  ;;  %vm1485_vm0 = vmpackc.low %vm310_vm9, %vm306_vm8  ;;  %vm396_vm8 = vcmp.eq.s32.totalorder %v1642_v2, %v1785_v24  ;;  %vm400_vm9 = vcmp.eq.s32.totalorder %v1657_v7, %v1785_v24 }
  0x24   : > { %1486 = vmatpush1.bf16.msk.msra.mxu0 %vm1485_vm0, %v1590_v15  ;;  %vm1501_vm3 = vmpackc.low %vm312_vm12, %vm308_vm11  ;;  %vm403_vm11 = vcmp.eq.s32.totalorder %v1661_v9, %v1758_v21  ;;  %vm407_vm12 = vcmp.eq.s32.totalorder %v1664_v10, %v1758_v21 }
  0x25   : > { %1502 = vmatpush1.bf16.msk.msra.mxu1 %vm1501_vm3, %v1590_v15  ;;  %vm1503_vm7 = vmpackc.low %vm399_vm15, %vm395_vm14  ;;  %vm405_vm14 = vcmp.eq.s32.totalorder %v1661_v9, %v1767_v22  ;;  %vm409_vm15 = vcmp.eq.s32.totalorder %v1664_v10, %v1767_v22 }
  0x26   : > { %1504 = vmatprep.subr.msk.bf16.mxu0 %vm1503_vm7, %v1590_v15  ;;  %vm1519_vm10 = vmpackc.low %vm401_vm2, %vm397_vm1  ;;  %vm402_vm1 = vcmp.eq.s32.totalorder %v1661_v9, %v1776_v23  ;;  %vm406_vm2 = vcmp.eq.s32.totalorder %v1664_v10, %v1776_v23 }
  0x27   : > { %1393 = vmatmul.mubr.msk.f32.vlgmr.msra.gmra.mrb[0].mxu0 %vm494_vm4, %v1801_v25  ;;  %1520 = vmatprep.subr.msk.bf16.mxu1 %vm1519_vm10, %v1590_v15  ;;  %vm1505_vm13 = vmpackc.low %vm398_vm6, %vm394_vm5  ;;  %vm404_vm5 = vcmp.eq.s32.totalorder %v1661_v9, %v1785_v24  ;;  %vm408_vm6 = vcmp.eq.s32.totalorder %v1664_v10, %v1785_v24 }
  0x28   : > { %1413 = vmatmul.mubr.msk.f32.vlgmr.msra.gmra.mrb[0].mxu1 %vm494_vm4, %v1801_v25  ;;  %1506 = vmatpush1.bf16.msk.msra.mxu0 %vm1505_vm13, %v1590_v15  ;;  %vm1521_vm0 = vmpackc.low %vm400_vm9, %vm396_vm8  ;;  %vm411_vm8 = vcmp.eq.s32.totalorder %v1704_v16, %v1758_v21  ;;  %vm415_vm9 = vcmp.eq.s32.totalorder %v1707_v17, %v1758_v21 }
  0x29   : > { %1522 = vmatpush1.bf16.msk.msra.mxu1 %vm1521_vm0, %v1590_v15  ;;  %577 = vmatprep.mubr.f32.mxu0 %v1589_v1  ;;  %vm1507_vm3 = vmpackc.low %vm407_vm12, %vm403_vm11  ;;  %vm413_vm11 = vcmp.eq.s32.totalorder %v1704_v16, %v1767_v22  ;;  %vm417_vm12 = vcmp.eq.s32.totalorder %v1707_v17, %v1767_v22 }
  0x2a   : > { %666 = vmatprep.mubr.f32.mxu1 %v1589_v1  ;;  %1508 = vmatprep.subr.msk.bf16.mxu0 %vm1507_vm3, %v1590_v15  ;;  %vm1523_vm7 = vmpackc.low %vm409_vm15, %vm405_vm14  ;;  %vm410_vm14 = vcmp.eq.s32.totalorder %v1704_v16, %v1776_v23  ;;  %vm414_vm15 = vcmp.eq.s32.totalorder %v1707_v17, %v1776_v23 }
  0x2b   : > { %1394 = vmatmul.mubr.msk.f32.gmra.mrb[2].mxu0 %vm494_vm4, %v1830_v26  ;;  %1524 = vmatprep.subr.msk.bf16.mxu1 %vm1523_vm7, %v1590_v15  ;;  %vm1509_vm10 = vmpackc.low %vm406_vm2, %vm402_vm1  ;;  %vm412_vm1 = vcmp.eq.s32.totalorder %v1704_v16, %v1785_v24  ;;  %vm416_vm2 = vcmp.eq.s32.totalorder %v1707_v17, %v1785_v24 }
  0x2c   : > { %1414 = vmatmul.mubr.msk.f32.gmra.mrb[2].mxu1 %vm494_vm4, %v1830_v26  ;;  %1510 = vmatpush1.bf16.msk.msra.mxu0 %vm1509_vm10, %v1590_v15  ;;  %vm1525_vm13 = vmpackc.low %vm408_vm6, %vm404_vm5  ;;  %vm419_vm5 = vcmp.eq.s32.totalorder %v1730_v18, %v1758_v21  ;;  %vm423_vm6 = vcmp.eq.s32.totalorder %v1733_v19, %v1758_v21 }
  0x2d   : > { %1526 = vmatpush1.bf16.msk.msra.mxu1 %vm1525_vm13, %v1590_v15  ;;  %583 = vmatprep.mubr.f32.mxu0 %v1589_v1  ;;  %vm1511_vm0 = vmpackc.low %vm415_vm9, %vm411_vm8  ;;  %vm421_vm8 = vcmp.eq.s32.totalorder %v1730_v18, %v1767_v22  ;;  %vm425_vm9 = vcmp.eq.s32.totalorder %v1733_v19, %v1767_v22 }
  0x2e   : > { %672 = vmatprep.mubr.f32.mxu1 %v1589_v1  ;;  %1512 = vmatprep.subr.msk.bf16.mxu0 %vm1511_vm0, %v1590_v15  ;;  %vm1527_vm3 = vmpackc.low %vm417_vm12, %vm413_vm11  ;;  %vm418_vm11 = vcmp.eq.s32.totalorder %v1730_v18, %v1776_v23  ;;  %vm422_vm12 = vcmp.eq.s32.totalorder %v1733_v19, %v1776_v23 }
  0x2f   : > { %1395 = vmatmul.mubr.msk.f32.gmra.mrb[4].mxu0 %vm494_vm4, %v492_v27  ;;  %1528 = vmatprep.subr.msk.bf16.mxu1 %vm1527_vm3, %v1590_v15  ;;  %vm1513_vm7 = vmpackc.low %vm414_vm15, %vm410_vm14  ;;  %vm420_vm14 = vcmp.eq.s32.totalorder %v1730_v18, %v1785_v24  ;;  %vm424_vm15 = vcmp.eq.s32.totalorder %v1733_v19, %v1785_v24  ;;  %vm1251_vm3 = vcmp.lt.s32.totalorder %v257_v0, 512 }
  0x30   : > { %1415 = vmatmul.mubr.msk.f32.gmra.mrb[4].mxu1 %vm494_vm4, %v492_v27  ;;  %1514 = vmatpush1.bf16.msk.msra.mxu0 %vm1513_vm7, %v1590_v15  ;;  %vm1529_vm10 = vmpackc.low %vm416_vm2, %vm412_vm1 }
  0x31   : > { %1530 = vmatpush1.bf16.msk.msra.mxu1 %vm1529_vm10, %v1590_v15  ;;  %589 = vmatprep.mubr.f32.mxu0 %v1589_v1  ;;  %vm1515_vm13 = vmpackc.low %vm423_vm6, %vm419_vm5 }
  0x32   : > { %678 = vmatprep.mubr.f32.mxu1 %v1589_v1  ;;  %1516 = vmatprep.subr.msk.bf16.mxu0 %vm1515_vm13, %v1590_v15  ;;  %vm1531_vm0 = vmpackc.low %vm425_vm9, %vm421_vm8 }
  0x33   : > { %1396 = vmatmul.mubr.msk.f32.gmra.mrb[6].mxu0 %vm494_vm4, %v493_v28  ;;  %1532 = vmatprep.subr.msk.bf16.mxu1 %vm1531_vm0, %v1590_v15  ;;  %vm1517_vm1 = vmpackc.low %vm422_vm12, %vm418_vm11 }
  0x34   : > { %1416 = vmatmul.mubr.msk.f32.gmra.mrb[6].mxu1 %vm494_vm4, %v493_v28  ;;  %1518 = vmatpush1.bf16.msk.msra.mxu0 %vm1517_vm1, %v1590_v15  ;;  %vm1533_vm2 = vmpackc.low %vm424_vm15, %vm420_vm14 }
  0x35   : > { %1534 = vmatpush1.bf16.msk.msra.mxu1 %vm1533_vm2, %v1590_v15  ;;  %749 = vmatprep.mubr.f32.mxu0 %v1589_v1 }
  0x36   : > { %838 = vmatprep.mubr.f32.mxu1 %v1589_v1 }
  0x37   : > { %1433 = vmatmul.mubr.msk.f32.vlgmr.msra.gmra.mrb[8].mxu0 %vm494_vm4, %v1801_v25 }
  0x38   : > { %1453 = vmatmul.mubr.msk.f32.vlgmr.msra.gmra.mrb[8].mxu1 %vm494_vm4, %v1801_v25  ;;  %755 = vmatprep.mubr.f32.mxu0 %v1589_v1 }
  0x39   : > { %844 = vmatprep.mubr.f32.mxu1 %v1589_v1 }
  0x3b   : > { %1434 = vmatmul.mubr.msk.f32.gmra.mrb[10].mxu0 %vm494_vm4, %v1830_v26 }
  0x3c   : > { %1454 = vmatmul.mubr.msk.f32.gmra.mrb[10].mxu1 %vm494_vm4, %v1830_v26  ;;  %761 = vmatprep.mubr.f32.mxu0 %v1589_v1 }
  0x3d   : > { %850 = vmatprep.mubr.f32.mxu1 %v1589_v1 }
  0x3f   : > { %1435 = vmatmul.mubr.msk.f32.gmra.mrb[12].mxu0 %vm494_vm4, %v492_v27 }
  0x40   : > { %1455 = vmatmul.mubr.msk.f32.gmra.mrb[12].mxu1 %vm494_vm4, %v492_v27  ;;  %767 = vmatprep.mubr.f32.mxu0 %v1589_v1 }
  0x41   : > { %856 = vmatprep.mubr.f32.mxu1 %v1589_v1 }
  0x43   : > { %1436 = vmatmul.mubr.msk.f32.gmra.mrb[14].mxu0 %vm494_vm4, %v493_v28 }
  0x44   : > { %1456 = vmatmul.mubr.msk.f32.gmra.mrb[14].mxu1 %vm494_vm4, %v493_v28  ;;  %984 = vmatprep.mubr.f32.mxu0 %v1589_v1  ;;  %vm907_vm4 = vcmask 261120  }
  0x45   : > { %1073 = vmatprep.mubr.f32.mxu1 %v1589_v1 }
  0x88   : > { %v890_v37 = vpop.permute.xlu0 %889 }
  0xfa   : > { %v573_v38 = vpop.f32.mrb[0].mxu0 }
  0xfb   : > { %v662_v39 = vpop.f32.mrb[0].mxu1  ;;  %v575_v40 = vpop.f32.mrb[1].mxu0 }
  0xfc   : > { %v664_v41 = vpop.f32.mrb[1].mxu1 }
  0xfe   : > { %v579_v42 = vpop.f32.mrb[2].mxu0 }
  0xff   : > { %v668_v43 = vpop.f32.mrb[2].mxu1  ;;  %v581_v44 = vpop.f32.mrb[3].mxu0 }
 0x100   : > { %v670_v45 = vpop.f32.mrb[3].mxu1 }
 0x102   : > { %v585_v46 = vpop.f32.mrb[4].mxu0 }
 0x103   : > { %v674_v47 = vpop.f32.mrb[4].mxu1  ;;  %v587_v48 = vpop.f32.mrb[5].mxu0 }
 0x104   : > { %v676_v49 = vpop.f32.mrb[5].mxu1 }
 0x106   : > { %v591_v50 = vpop.f32.mrb[6].mxu0 }
 0x107   : > { %v680_v51 = vpop.f32.mrb[6].mxu1  ;;  %v593_v52 = vpop.f32.mrb[7].mxu0 }
 0x108   : > { %v682_v53 = vpop.f32.mrb[7].mxu1 }
 0x10a   : > { %v751_v54 = vpop.f32.mrb[8].mxu0 }
 0x10b   : > { %v863_v55 = vmul.f32 %v751_v54, %v573_v38  ;;  %v840_v56 = vpop.f32.mrb[8].mxu1  ;;  %v753_v57 = vpop.f32.mrb[9].mxu0 }
 0x10c   : > { %v865_v58 = vmul.f32 %v840_v56, %v662_v39  ;;  %v864_v59 = vmul.f32 %v753_v57, %v575_v40  ;;  %v842_v60 = vpop.f32.mrb[9].mxu1  ;;  %v900_v38 = vpop.permute.xlu1 %899 }
 0x10d   : > { %v866_v61 = vmul.f32 %v842_v60, %v664_v41  ;;  %v895_v39 = vpop.permute.xlu0 %894 }
 0x10e   : > { %v757_v62 = vpop.f32.mrb[10].mxu0 }
 0x10f   : > { %v867_v63 = vmul.f32 %v757_v62, %v579_v42  ;;  %v846_v3 = vpop.f32.mrb[10].mxu1  ;;  %v759_v4 = vpop.f32.mrb[11].mxu0 }
 0x110   : > { %v869_v5 = vmul.f32 %v846_v3, %v668_v43  ;;  %v868_v6 = vmul.f32 %v759_v4, %v581_v44  ;;  %v848_v7 = vpop.f32.mrb[11].mxu1  ;;  %v905_v44 = vpop.permute.xlu1 %904 }
 0x111   : > { %v1537_v8 = vpack.c.bf16 %v867_v63, %v863_v55  ;;  %v870_v9 = vmul.f32 %v848_v7, %v670_v45  ;;  %v1121_v56 = vpop.permute.xlu0 %1120 }
 0x112   : > { %v1545_v10 = vpack.c.bf16 %v869_v5, %v865_v58  ;;  %v1535_v11 = vpack.c.bf16 %v868_v6, %v864_v59  ;;  %v763_v12 = vpop.f32.mrb[12].mxu0 }
 0x113   : > { %v1543_v13 = vpack.c.bf16 %v870_v9, %v866_v61  ;;  %v871_v14 = vmul.f32 %v763_v12, %v585_v46  ;;  %v852_v15 = vpop.f32.mrb[12].mxu1  ;;  %v765_v16 = vpop.f32.mrb[13].mxu0 }
 0x114   : > { %v873_v17 = vmul.f32 %v852_v15, %v674_v47  ;;  %v872_v18 = vmul.f32 %v765_v16, %v587_v48  ;;  %v854_v19 = vpop.f32.mrb[13].mxu1  ;;  %1536 = vmatprep.subr.bf16.mxu0 %v1535_v11  ;;  %v1126_v6 = vpop.permute.xlu1 %1125 }
 0x115   : > { %v874_v20 = vmul.f32 %v854_v19, %v676_v49  ;;  %1544 = vmatprep.subr.bf16.mxu1 %v1543_v13  ;;  %1538 = vmatpush1.bf16.msra.mxu0 %v1537_v8 }
 0x116   : > { %1546 = vmatpush1.bf16.msra.mxu1 %v1545_v10  ;;  %v769_v21 = vpop.f32.mrb[14].mxu0 }
 0x117   : > { %v875_v22 = vmul.f32 %v769_v21, %v591_v50  ;;  %v858_v23 = vpop.f32.mrb[14].mxu1  ;;  %v771_v24 = vpop.f32.mrb[15].mxu0 }
 0x118   : > { %v877_v25 = vmul.f32 %v858_v23, %v680_v51  ;;  %v876_v26 = vmul.f32 %v771_v24, %v593_v52  ;;  %v860_v27 = vpop.f32.mrb[15].mxu1  ;;  %v1131_v23 = vpop.permute.xlu0 %1130 }
 0x119   : > { %v1541_v28 = vpack.c.bf16 %v875_v22, %v871_v14  ;;  %v878_v29 = vmul.f32 %v860_v27, %v682_v53 }
 0x11a   : > { %v1549_v30 = vpack.c.bf16 %v877_v25, %v873_v17  ;;  %v1539_v31 = vpack.c.bf16 %v876_v26, %v872_v18 }
 0x11b   : > { %v1547_v32 = vpack.c.bf16 %v878_v29, %v874_v20 }
 0x11c   : > { %1540 = vmatprep.subr.bf16.mxu0 %v1539_v31 }
 0x11d   : > { %1548 = vmatprep.subr.bf16.mxu1 %v1547_v32  ;;  %1542 = vmatpush1.bf16.msra.mxu0 %v1541_v28 }
 0x11e   : > { %1550 = vmatpush1.bf16.msra.mxu1 %v1549_v30 }
 0x120   : > { %1457 = vmatmul.mubr.msk.f32.vlgmr.msra.gmra.mrb[16].mxu0 %vm907_vm4, %v879_v33 }
 0x121   : > { %1461 = vmatmul.mubr.msk.f32.vlgmr.msra.gmra.mrb[16].mxu1 %vm907_vm4, %v879_v33  ;;  %990 = vmatprep.mubr.f32.mxu0 %v1589_v1 }
 0x122   : > { %1079 = vmatprep.mubr.f32.mxu1 %v1589_v1 }
 0x124   : > { %1458 = vmatmul.mubr.msk.f32.gmra.mrb[18].mxu0 %vm907_vm4, %v880_v34 }
 0x125   : > { %1462 = vmatmul.mubr.msk.f32.gmra.mrb[18].mxu1 %vm907_vm4, %v880_v34  ;;  %996 = vmatprep.mubr.f32.mxu0 %v1589_v1 }
 0x126   : > { %1085 = vmatprep.mubr.f32.mxu1 %v1589_v1 }
 0x128   : > { %1459 = vmatmul.mubr.msk.f32.gmra.mrb[20].mxu0 %vm907_vm4, %v881_v35 }
 0x129   : > { %1463 = vmatmul.mubr.msk.f32.gmra.mrb[20].mxu1 %vm907_vm4, %v881_v35  ;;  %1002 = vmatprep.mubr.f32.mxu0 %v1589_v1 }
 0x12a   : > { %1091 = vmatprep.mubr.f32.mxu1 %v1589_v1 }
 0x12c   : > { %1460 = vmatmul.mubr.msk.f32.gmra.mrb[22].mxu0 %vm907_vm4, %v882_v36 }
 0x12d   : > { %1464 = vmatmul.mubr.msk.f32.gmra.mrb[22].mxu1 %vm907_vm4, %v882_v36 }
 0x1f3   : > { %v986_v40 = vpop.f32.mrb[16].mxu0 }
 0x1f4   : > { %v987_v41 = vadd.f32 %v986_v40, %v890_v37  ;;  %v1075_v42 = vpop.f32.mrb[16].mxu1  ;;  %v988_v43 = vpop.f32.mrb[17].mxu0 }
 0x1f5   : > { %v1076_v45 = vadd.f32 %v1075_v42, %v890_v37  ;;  %v989_v46 = vadd.f32 %v988_v43, %v890_v37  ;;  %v1077_v47 = vpop.f32.mrb[17].mxu1 }
 0x1f6   : > { %v1098_v48 = vmax.f32 %v987_v41, 0.0  ;;  %v1078_v49 = vadd.f32 %v1077_v47, %v890_v37  ;;  %v1136_v47 = vpop.permute.xlu1 %1135 }
 0x1f7   : > { %v1100_v50 = vmax.f32 %v1076_v45, 0.0  ;;  %v1099_v51 = vmax.f32 %v989_v46, 0.0  ;;  %v992_v1 = vpop.f32.mrb[18].mxu0 }
 0x1f8   : > { %v1101_v52 = vmax.f32 %v1078_v49, 0.0  ;;  %v993_v53 = vadd.f32 %v992_v1, %v895_v39  ;;  %v1081_v54 = vpop.f32.mrb[18].mxu1  ;;  %v994_v55 = vpop.f32.mrb[19].mxu0  ;;  %v1138_v60 = vmul.f32 %v1121_v56, %v1098_v48 }
 0x1f9   : > { %v1082_v57 = vadd.f32 %v1081_v54, %v895_v39  ;;  %v995_v58 = vadd.f32 %v994_v55, %v895_v39  ;;  %v1083_v59 = vpop.f32.mrb[19].mxu1  ;;  %v1139_v63 = vmul.f32 %v1121_v56, %v1099_v51  ;;  %v1140_v3 = vmul.f32 %v1121_v56, %v1100_v50 }
 0x1fa   : > { %v1102_v61 = vmax.f32 %v993_v53, 0.0  ;;  %v1084_v62 = vadd.f32 %v1083_v59, %v895_v39  ;;  %v1141_v8 = vmul.f32 %v1121_v56, %v1101_v52 }
 0x1fb   : > { %v1104_v4 = vmax.f32 %v1082_v57, 0.0  ;;  %v1103_v5 = vmax.f32 %v995_v58, 0.0  ;;  %v998_v7 = vpop.f32.mrb[20].mxu0 }
 0x1fc   : > { %v1105_v9 = vmax.f32 %v1084_v62, 0.0  ;;  %v1142_v10 = vmul.f32 %v1126_v6, %v1102_v61  ;;  %v999_v11 = vadd.f32 %v998_v7, %v900_v38  ;;  %v1087_v12 = vpop.f32.mrb[20].mxu1  ;;  %v1000_v13 = vpop.f32.mrb[21].mxu0 }
 0x1fd   : > { %v1143_v14 = vmul.f32 %v1126_v6, %v1103_v5  ;;  %v1144_v15 = vmul.f32 %v1126_v6, %v1104_v4  ;;  %v1088_v16 = vadd.f32 %v1087_v12, %v900_v38  ;;  %v1001_v17 = vadd.f32 %v1000_v13, %v900_v38  ;;  %v1089_v18 = vpop.f32.mrb[21].mxu1 }
 0x1fe   : > { %v1145_v19 = vmul.f32 %v1126_v6, %v1105_v9  ;;  %v1106_v20 = vmax.f32 %v999_v11, 0.0  ;;  %v1154_v21 = vadd.f32 %v1142_v10, %v1138_v60  ;;  %v1090_v22 = vadd.f32 %v1089_v18, %v900_v38 }
 0x1ff   : > { %v1108_v24 = vmax.f32 %v1088_v16, 0.0  ;;  %v1172_v25 = vadd.f32 %v1144_v15, %v1140_v3  ;;  %v1107_v26 = vmax.f32 %v1001_v17, 0.0  ;;  %v1163_v27 = vadd.f32 %v1143_v14, %v1139_v63  ;;  %v1004_v28 = vpop.f32.mrb[22].mxu0 }
 0x200   : > { %v1146_v29 = vmul.f32 %v1131_v23, %v1106_v20  ;;  %v1109_v30 = vmax.f32 %v1090_v22, 0.0  ;;  %v1181_v31 = vadd.f32 %v1145_v19, %v1141_v8  ;;  %v1005_v32 = vadd.f32 %v1004_v28, %v905_v44  ;;  %v1093_v33 = vpop.f32.mrb[22].mxu1  ;;  %v1006_v34 = vpop.f32.mrb[23].mxu0 }
 0x201   : > { %v1148_v35 = vmul.f32 %v1131_v23, %v1108_v24  ;;  %v1147_v36 = vmul.f32 %v1131_v23, %v1107_v26  ;;  %v1094_v37 = vadd.f32 %v1093_v33, %v905_v44  ;;  %v1007_v39 = vadd.f32 %v1006_v34, %v905_v44  ;;  %v1095_v40 = vpop.f32.mrb[23].mxu1 }
 0x202   : > { %v1155_v41 = vadd.f32 %v1154_v21, %v1146_v29  ;;  %v1149_v42 = vmul.f32 %v1131_v23, %v1109_v30  ;;  %v1110_v38 = vmax.f32 %v1005_v32, 0.0  ;;  %v1096_v43 = vadd.f32 %v1095_v40, %v905_v44 }
 0x203   : > { %v1173_v45 = vadd.f32 %v1172_v25, %v1148_v35  ;;  %v1164_v46 = vadd.f32 %v1163_v27, %v1147_v36  ;;  %v1112_v48 = vmax.f32 %v1094_v37, 0.0  ;;  %v1111_v49 = vmax.f32 %v1007_v39, 0.0 }
 0x204   : > { %v1182_v50 = vadd.f32 %v1181_v31, %v1149_v42  ;;  %v1150_v51 = vmul.f32 %v1136_v47, %v1110_v38  ;;  %v1113_v1 = vmax.f32 %v1096_v43, 0.0  ;;  %v1191_v14 = vstv %s1190_s14 }
 0x205   : > { %v1152_v52 = vmul.f32 %v1136_v47, %v1112_v48  ;;  %v1151_v53 = vmul.f32 %v1136_v47, %v1111_v49  ;;  %v1592_v39 = vmov 1966171168  }
 0x206   : > { %v1156_v54 = vadd.f32 %v1155_v41, %v1150_v51  ;;  %v1153_v55 = vmul.f32 %v1136_v47, %v1113_v1  ;;  %v1227_v40 = vunpack.c.l.s4 %v1592_v39 }
 0x207   : > { %v1174_v56 = vadd.f32 %v1173_v45, %v1152_v52  ;;  %v1165_v57 = vadd.f32 %v1164_v46, %v1151_v53 }
 0x208   : > { %v1157_v58 = vrot.slane %v1156_v54, 4  ;;  %v1183_v59 = vadd.f32 %v1182_v50, %v1153_v55  ;;  %v1228_v41 = vunpack.c.0.s8 %v1227_v40 }
 0x209   : > { %v1175_v60 = vrot.slane %v1174_v56, 4  ;;  %v1166_v61 = vrot.slane %v1165_v57, 4 }
 0x20a   : > { %v1158_v44 = vadd.f32 %v1157_v58, %v1156_v54  ;;  %v1184_v62 = vrot.slane %v1183_v59, 4  ;;  %v1231_v43 = vsub.s32 %v1228_v41, %v1642_v2 }
 0x20b   : > { %v1176_v63 = vadd.f32 %v1175_v60, %v1174_v56  ;;  %v1167_v3 = vadd.f32 %v1166_v61, %v1165_v57 }
 0x20c   : > { %v1159_v4 = vrot.slane %v1158_v44, 2  ;;  %v1185_v5 = vadd.f32 %v1184_v62, %v1183_v59 }
 0x20d   : > { %v1177_v6 = vrot.slane %v1176_v63, 2  ;;  %v1168_v7 = vrot.slane %v1167_v3, 2 }
 0x20e   : > { %v1160_v8 = vadd.f32 %v1159_v4, %v1158_v44  ;;  %v1186_v9 = vrot.slane %v1185_v5, 2 }
 0x20f   : > { %v1178_v10 = vadd.f32 %v1177_v6, %v1176_v63  ;;  %v1169_v11 = vadd.f32 %v1168_v7, %v1167_v3 }
 0x210   : > { %v1161_v12 = vrot.slane %v1160_v8, 1  ;;  %v1187_v13 = vadd.f32 %v1186_v9, %v1185_v5 }
 0x211   : > { %v1179_v15 = vrot.slane %v1178_v10, 1  ;;  %v1170_v16 = vrot.slane %v1169_v11, 1 }
 0x212   : > { %v1162_v17 = vadd.f32 %v1161_v12, %v1160_v8  ;;  %v1188_v18 = vrot.slane %v1187_v13, 1 }
 0x213   : > { %v1180_v19 = vadd.f32 %v1179_v15, %v1178_v10  ;;  %v1171_v20 = vadd.f32 %v1170_v16, %v1169_v11 }
 0x214   : > { %v1192_v21 = vadd.f32 %v1191_v14, %v1162_v17  ;;  %v1189_v22 = vadd.f32 %v1188_v18, %v1187_v13 }
 0x215   : > { %v1194_v23 = vadd.f32 %v1191_v14, %v1180_v19  ;;  %v1193_v24 = vadd.f32 %v1191_v14, %v1171_v20 }
 0x216   : > { %v1465_v25 = vmul.f32 -1.442695, %v1192_v21  ;;  %v1195_v26 = vadd.f32 %v1191_v14, %v1189_v22 }
 0x217   : > { %v1467_v27 = vmul.f32 -1.442695, %v1194_v23  ;;  %v1466_v28 = vmul.f32 -1.442695, %v1193_v24 }
 0x218   : > { %1565 = vpow2.f32 %v1465_v25  ;;  %v1468_v29 = vmul.f32 -1.442695, %v1195_v26 }
 0x219   : > { %1567 = vpow2.f32 %v1467_v27 }
 0x21a   : > { %1569 = vpow2.f32 %v1466_v28 }
 0x21b   : > { %1571 = vpow2.f32 %v1468_v29 }
 0x222   : > { %v1566_v30 = vpop.eup %1565 }
 0x223   : > { %v1568_v31 = vpop.eup %1567  ;;  %v1208_v32 = vadd.f32 1.0, %v1566_v30 }
 0x224   : > { %v1570_v33 = vpop.eup %1569  ;;  %v1210_v34 = vadd.f32 1.0, %v1568_v31 }
 0x225   : > { %v1572_v35 = vpop.eup %1571  ;;  %1573 = vrcp.f32 %v1208_v32  ;;  %v1209_v36 = vadd.f32 1.0, %v1570_v33 }
 0x226   : > { %1575 = vrcp.f32 %v1210_v34  ;;  %v1211_v37 = vadd.f32 1.0, %v1572_v35 }
 0x227   : > { %1577 = vrcp.f32 %v1209_v36 }
 0x228   : > { %1579 = vrcp.f32 %v1211_v37 }
 0x22f   : > { %v1574_v42 = vpop.eup %1573 }
 0x230   : > { %v1576_v38 = vpop.eup %1575 }
 0x231   : > { %v1578_v45 = vpop.eup %1577 }
 0x232   : > { %v1580_v46 = vpop.eup %1579  ;;  %v1224_v47 = vcombine.low %v1574_v42, %v1578_v45 }
 0x233   : > { %v1225_v48 = vcombine.low %v1576_v38, %v1580_v46 }
 0x234   : > { %v1232_v49 = vrot.slane %v1224_v47, %v1231_v43 }
 0x235   : > { %v1239_v50 = vrot.slane %v1225_v48, %v1231_v43 }
 0x237   : > { %v1240_v51 = vcombine.low %v1232_v49, %v1239_v50 }
 0x239   : > { %v1247_v1 = vrot.slane %v1240_v51, %v1231_v43 }
 0x23b   : > { %1253 = vst.msk [vmem:[%s252_s17] sm:$0xf] %vm1251_vm3, %v1247_v1 }
 0x23c PF: > { %s17_s23 = sadd.s32 1, %s1587_s23  }
 0x23d   : > { %p14_p4 = scmp.ge.s32.totalorder %s17_s23, 4  }
 0x23f   :  { %16 = sbr.rel (!%p14_p4) target bundleno = 2 (0x2), region = 75 }

</bundles_post_ra>
